<compile_context>
chip_gen: v6e
topology: v6e:2x2x1
jax: 0.10.0
libtpu: 0.0.40
codegen_flags: <defaults>
</compile_context>

<pallas_src>
import functools

import numpy as np

import jax
import jax.numpy as jnp
from jax.experimental import pallas as pl
from jax.experimental.pallas import tpu as pltpu


_KP = 128  # lane-padded width of the running top-k state (k_top <= _KP)


# --------------------------------------------------------------------------
# Kernel
# --------------------------------------------------------------------------
def _fft_topk_kernel(x_ref, w_ref, mag_ref, re_ref, im_ref,
                     st_m2, st_re, st_im, *, k_top, tn, n_valid, resident):
    """Grid step (b, j): one batch tile x one frequency-bin tile.

    One bf16 MXU matmul against the [cos | -sin] basis tile for bins
    j*tn+1 .. j*tn+tn, then a streaming merge of the (tb, tn) candidates into
    the running (tb, _KP) top-k state (mag^2 / Re / Im) held in VMEM scratch.
    Outputs are emitted once the last bin tile of the batch tile is merged.
    """
    j = pl.program_id(1)

    # ---- reset the running top-k state at the start of every batch tile ----
    @pl.when(j == 0)
    def _():
        st_m2[...] = jnp.full(st_m2.shape, -1.0, jnp.float32)
        st_re[...] = jnp.zeros(st_re.shape, jnp.float32)
        st_im[...] = jnp.zeros(st_im.shape, jnp.float32)

    # ---- DFT slab for this bin tile: bf16 x bf16 -> f32 on the MXU ----------
    # resident: full basis lives in VMEM (DMA'd once); pick tile j off axis 0.
    # streamed: w_ref already is the (1, seq, 2*tn) tile for this j.
    w_tile = w_ref[j] if resident else w_ref[0]          # (seq, 2*tn)
    slab = jnp.dot(x_ref[...], w_tile, preferred_element_type=jnp.float32)
    re = slab[:, :tn]                                    # (tb, tn)
    im = slab[:, tn:]                                    # (tb, tn)
    m2 = re * re + im * im                               # select on |X|^2

    tb = re.shape[0]
    local = jax.lax.broadcasted_iota(jnp.int32, (tb, tn), 1)
    # Mask zero-padded tail bins (|X|^2 >= 0, so -1 means "masked").
    m2 = jnp.where(local + j * tn < n_valid, m2, jnp.float32(-1.0))

    # ---- streaming top-k merge: state (tb, KP)  U  tile (tb, tn) ------------
    cm = jnp.concatenate([st_m2[...], m2], axis=-1)      # (tb, KP + tn)
    cr = jnp.concatenate([st_re[...], re], axis=-1)
    ci = jnp.concatenate([st_im[...], im], axis=-1)
    width = cm.shape[-1]
    colf = jax.lax.broadcasted_iota(jnp.int32, (tb, width), 1).astype(jnp.float32)
    slot = jax.lax.broadcasted_iota(jnp.int32, st_m2.shape, 1)   # (tb, KP)

    new_m2 = jnp.full(st_m2.shape, -1.0, jnp.float32)
    new_re = jnp.zeros(st_re.shape, jnp.float32)
    new_im = jnp.zeros(st_im.shape, jnp.float32)

    # k_top is small & static -> unrolled; 4 cross-lane reductions per step,
    # hidden under the next tile's DMA / matmul by the pipeline.
    for i in range(k_top):
        mval = jnp.max(cm, axis=-1, keepdims=True)                       # (tb,1)
        sel = jnp.min(jnp.where(cm == mval, colf, jnp.float32(width)),
                      axis=-1, keepdims=True)                            # (tb,1)
        hit = colf == sel                                                # (tb,W)
        ri = jnp.sum(jnp.where(hit, cr, 0.0), axis=-1, keepdims=True)
        ii = jnp.sum(jnp.where(hit, ci, 0.0), axis=-1, keepdims=True)
        write = slot == i
        new_m2 = jnp.where(write, mval, new_m2)
        new_re = jnp.where(write, ri, new_re)
        new_im = jnp.where(write, ii, new_im)
        cm = jnp.where(hit, jnp.float32(-1.0), cm)

    st_m2[...] = new_m2
    st_re[...] = new_re
    st_im[...] = new_im

    # ---- emit the per-row top-k once every bin tile has been merged ---------
    @pl.when(j == pl.num_programs(1) - 1)
    def _():
        mag_ref[...] = jnp.sqrt(jnp.maximum(new_m2[:, :k_top], 0.0))
        re_ref[...] = new_re[:, :k_top]
        im_ref[...] = new_im[:, :k_top]


# --------------------------------------------------------------------------
# Host-side planning + basis construction
# --------------------------------------------------------------------------
def _vmem_cap_bytes() -> int:
    """Physical VMEM per TensorCore; conservative 64 MiB (v7x) fallback."""
    try:
        info = pltpu.get_tpu_info()
        for name in ("vmem_capacity_bytes", "vmem_size_bytes", "vmem_bytes"):
            v = getattr(info, name, None)
            if v:
                return int(v)
    except Exception:
        pass
    return 64 << 20


def _num_tensorcores() -> int:
    try:
        info = pltpu.get_tpu_info()
        for name in ("num_cores", "core_count", "num_tensorcores"):
            v = getattr(info, name, None)
            if v:
                return int(v)
    except Exception:
        pass
    return 1   # v5e / v6e (single TensorCore) behaviour by default


def _vmem_need_bytes(tb, tn, seq, n_tiles, resident) -> int:
    """Conservative per-step VMEM estimate (2x buffering assumed everywhere)."""
    x_bytes = 2 * tb * seq * 2                             # bf16 x tile
    if resident:
        w_bytes = 2 * n_tiles * seq * (2 * tn) * 2         # full bf16 basis
    else:
        w_bytes = 2 * seq * (2 * tn) * 2                   # one bf16 column tile
    state = 3 * tb * _KP * 4
    outs = 2 * 3 * tb * _KP * 4
    temps = 8 * tb * (2 * tn + _KP) * 4                    # slab/Re/Im/merge temps
    return x_bytes + w_bytes + state + outs + temps


def _plan(bsz: int, seq: int, n_valid: int):
    """Pick (tb, tn, n_col_tiles, resident, vmem_cap) for this shape/chip."""
    cap = _vmem_cap_bytes()
    budget = int(cap * 0.6)        # headroom for Mosaic-internal scratch etc.
    cores = _num_tensorcores()

    # Batch tile: largest first, multiples of 16 (bf16 sublane packing).
    tb_cands = [t for t in (256, 128, 64, 32, 16) if t <= bsz and bsz % t == 0]
    if cores > 1:
        # v7x megacore: prefer >= `cores` batch tiles, but never below 64 rows.
        pref = [t for t in tb_cands if bsz // t >= cores and t >= 64]
        tb_cands = pref + [t for t in tb_cands if t not in pref]
    if bsz not in tb_cands:
        tb_cands.append(bsz)       # tiny / odd batch: single full-batch tile

    c_pad = -(-n_valid // 128) * 128                 # bins padded to lanes
    tn_cands = [t for t in (512, 256, 128) if t <= c_pad and c_pad % t == 0]

    # 1) resident-basis fast path: whole basis in VMEM, DMA'd from HBM once.
    for tb in tb_cands:
        for tn in tn_cands:
            n_tiles = c_pad // tn
            if _vmem_need_bytes(tb, tn, seq, n_tiles, True) <= budget:
                return tb, tn, n_tiles, True, cap
    # 2) streamed basis column tiles (double-buffered HBM -> VMEM).
    for tb in tb_cands:
        for tn in tn_cands:
            n_tiles = c_pad // tn
            if _vmem_need_bytes(tb, tn, seq, n_tiles, False) <= budget:
                return tb, tn, n_tiles, False, cap
    # 3) last resort (very long sequences) — see TODO(synk) on K-tiling above.
    return min(tb_cands), 128, c_pad // 128, False, cap


@functools.lru_cache(maxsize=2)   # small cache so the device basis can be evicted
def _dft_basis(seq: int, tn: int):
    """bf16 DFT basis for bins 1 .. seq//2 - 1, shaped (n_tiles, seq, 2*tn) with
    per-tile layout [cos | -sin] (FFT minus sign folded into the sin half)."""
    half = seq // 2
    n_valid = half - 1
    c_pad = -(-n_valid // 128) * 128
    assert c_pad % tn == 0
    n_tiles = c_pad // tn
    n = np.arange(seq, dtype=np.int64)[:, None]
    kbin = np.arange(1, 1 + n_valid, dtype=np.int64)[None, :]
    # Reduce n*k mod seq in integers first: accurate cos/sin args at large N.
    ang = (2.0 * np.pi / seq) * ((n * kbin) % seq).astype(np.float64)
    cos = np.zeros((seq, c_pad), np.float32)
    msin = np.zeros((seq, c_pad), np.float32)
    cos[:, :n_valid] = np.cos(ang)
    msin[:, :n_valid] = -np.sin(ang)
    w = np.empty((n_tiles, seq, 2 * tn), np.float32)
    for j in range(n_tiles):
        w[j, :, :tn] = cos[:, j * tn:(j + 1) * tn]
        w[j, :, tn:] = msin[:, j * tn:(j + 1) * tn]
    return jnp.asarray(w, dtype=jnp.bfloat16)


# --------------------------------------------------------------------------
# Public wrapper
# --------------------------------------------------------------------------
def fft_feature_extractor(x: jax.Array, n_features: int = 16) -> jax.Array:
    """Pallas implementation of FFTFeatureExtractor.forward.

    Args:
      x: (batch, seq) float array.
    Returns:
      (batch, 2 * (n_features // 2)) float32: [top-k magnitudes | top-k phases].
    """
    assert x.ndim == 2, x.shape
    bsz, seq = x.shape
    k_top = n_features // 2
    n_valid = seq // 2 - 1
    assert n_valid >= k_top, "sequence too short for requested n_features"
    assert k_top <= _KP

    tb, tn, n_col_tiles, resident, cap = _plan(bsz, seq, n_valid)
    w = _dft_basis(seq, tn)
    assert w.shape == (n_col_tiles, seq, 2 * tn), (w.shape, n_col_tiles, seq, tn)

    xb = x.astype(jnp.bfloat16)            # native MXU input dtype
    grid = (bsz // tb, n_col_tiles)

    if resident:
        # Full-array block, index never changes -> DMA'd from HBM exactly once.
        w_spec = pl.BlockSpec((n_col_tiles, seq, 2 * tn), lambda b, j: (0, 0, 0))
    else:
        w_spec = pl.BlockSpec((1, seq, 2 * tn), lambda b, j: (j, 0, 0))

    kernel = functools.partial(_fft_topk_kernel, k_top=k_top, tn=tn,
                               n_valid=n_valid, resident=resident)

    vmem_limit = int(min(max(int(cap * 0.85), 32 << 20), 128 << 20))

    out_shapes = (
        jax.ShapeDtypeStruct((bsz, k_top), jnp.float32),   # top |X|
        jax.ShapeDtypeStruct((bsz, k_top), jnp.float32),   # top Re(X)
        jax.ShapeDtypeStruct((bsz, k_top), jnp.float32),   # top Im(X)
    )

    top_mag, top_re, top_im = pl.pallas_call(
        kernel,
        out_shape=out_shapes,
        grid=grid,
        in_specs=[
            pl.BlockSpec((tb, seq), lambda b, j: (b, 0)),   # x: resident per batch tile
            w_spec,                                         # basis: resident or streamed
        ],
        out_specs=(
            pl.BlockSpec((tb, k_top), lambda b, j: (b, 0)),
            pl.BlockSpec((tb, k_top), lambda b, j: (b, 0)),
            pl.BlockSpec((tb, k_top), lambda b, j: (b, 0)),
        ),
        scratch_shapes=[
            pltpu.VMEM((tb, _KP), jnp.float32),   # running top-k |X|^2
            pltpu.VMEM((tb, _KP), jnp.float32),   # running top-k Re
            pltpu.VMEM((tb, _KP), jnp.float32),   # running top-k Im
        ],
        compiler_params=pltpu.CompilerParams(
            dimension_semantics=("parallel", "arbitrary"),
            vmem_limit_bytes=vmem_limit),
    )(xb, w)

    # torch.angle == atan2(imag, real), evaluated only on the k selected bins.
    # TODO(synk): atan2 stays in plain-JAX glue; Mosaic has no atan2 lowering.
    top_phase = jnp.arctan2(top_im, top_re)
    return jnp.concatenate([top_mag, top_phase], axis=-1)


# --------------------------------------------------------------------------
# Verification against a float64 FFT reference
# --------------------------------------------------------------------------
def _verify_against_fft(x, out, n_features, atol=0.15, rtol=2e-2,
                        phase_atol=0.15):
    """Order-insensitive check vs. np.fft (bf16 basis => near-tie picks and
    tie-break order may legally differ from torch's exact topk)."""
    x64 = np.asarray(x, dtype=np.float64)
    fft = np.fft.fft(x64, axis=-1)
    mag = np.abs(fft)
    ph = np.angle(fft)
    bsz, seq = x64.shape
    half = seq // 2
    k = n_features // 2
    out = np.asarray(out, dtype=np.float64)
    out_mag, out_ph = out[:, :k], out[:, k:]

    band_mag = mag[:, 1:half]
    band_ph = ph[:, 1:half]

    # (a) selected magnitudes ~= the k largest reference magnitudes.
    ref_sorted = -np.sort(-band_mag, axis=-1)[:, :k]
    got_sorted = -np.sort(-out_mag, axis=-1)
    np.testing.assert_allclose(got_sorted, ref_sorted, rtol=rtol, atol=atol)

    # (b) every emitted (magnitude, phase) pair matches a real spectral bin.
    for b in range(bsz):
        for i in range(k):
            dm = np.abs(band_mag[b] - out_mag[b, i])
            dp = np.abs(np.angle(np.exp(1j * (band_ph[b] - out_ph[b, i]))))
            ok = (dm <= atol + rtol * band_mag[b]) & (dp <= phase_atol)
            assert ok.any(), f"row {b}, slot {i}: no matching spectral bin"


if __name__ == "__main__":
    key = jax.random.PRNGKey(0)
    batch, seq = 4, 64
    n_features = 16
    x = jax.random.normal(key, (batch, seq), dtype=jnp.float32)

    out = fft_feature_extractor(x, n_features=n_features)
    out = jax.block_until_ready(out)

    assert out.shape == (batch, n_features), out.shape
    assert bool(jnp.all(jnp.isfinite(out)))
    _verify_against_fft(x, out, n_features)

    print("KERNEL_OK")
</pallas_src>

<mosaic_0001>
module attributes {stable_mosaic.version = 11 : i64} {
  func.func @_fft_topk_kernel(%arg0: i32, %arg1: i32, %arg2: memref<4x64xbf16, #tpu.memory_space<vmem>>, %arg3: memref<1x64x256xbf16, #tpu.memory_space<vmem>>, %arg4: memref<4x8xf32, #tpu.memory_space<vmem>>, %arg5: memref<4x8xf32, #tpu.memory_space<vmem>>, %arg6: memref<4x8xf32, #tpu.memory_space<vmem>>, %arg7: memref<4x128xf32, #tpu.memory_space<vmem>>, %arg8: memref<4x128xf32, #tpu.memory_space<vmem>>, %arg9: memref<4x128xf32, #tpu.memory_space<vmem>>) attributes {dimension_semantics = [#tpu.dimension_semantics<parallel>, #tpu.dimension_semantics<arbitrary>], iteration_bounds = array<i64: 1, 1>, scalar_prefetch = 0 : i64, scratch_operands = 3 : i64, tpu.core_type = #tpu.core_type<tc>, window_params = [{transform_indices = @transform_0, window_bounds = array<i64: 4, 64>}, {pipeline_mode = #tpu.pipeline_mode<synchronous>, transform_indices = @transform_1, window_bounds = array<i64: 1, 64, 256>}, {transform_indices = @transform_2, window_bounds = array<i64: 4, 8>}, {transform_indices = @transform_3, window_bounds = array<i64: 4, 8>}, {transform_indices = @transform_4, window_bounds = array<i64: 4, 8>}]} {
    %c0_i32 = arith.constant 0 : i32
    %0 = arith.cmpi eq, %arg1, %c0_i32 : i32
    %1 = arith.extui %0 : i1 to i32
    %c0_i32_0 = arith.constant 0 : i32
    %2 = arith.cmpi ne, %1, %c0_i32_0 : i32
    scf.if %2 {
      %cst_86 = arith.constant -1.000000e+00 : f32
      %285 = vector.broadcast %cst_86 : f32 to vector<4x128xf32>
      %c0_87 = arith.constant 0 : index
      %c0_88 = arith.constant 0 : index
      %286 = vector.load %arg7[%c0_87, %c0_88] : memref<4x128xf32, #tpu.memory_space<vmem>>, vector<4x128xf32>
      tpu.vector_store %arg7[%c0_87, %c0_88], %285 {strides = array<i32>} : memref<4x128xf32, #tpu.memory_space<vmem>>, vector<4x128xf32>,
      %cst_89 = arith.constant 0.000000e+00 : f32
      %287 = vector.broadcast %cst_89 : f32 to vector<4x128xf32>
      %c0_90 = arith.constant 0 : index
      %c0_91 = arith.constant 0 : index
      %288 = vector.load %arg8[%c0_90, %c0_91] : memref<4x128xf32, #tpu.memory_space<vmem>>, vector<4x128xf32>
      tpu.vector_store %arg8[%c0_90, %c0_91], %287 {strides = array<i32>} : memref<4x128xf32, #tpu.memory_space<vmem>>, vector<4x128xf32>,
      %cst_92 = arith.constant 0.000000e+00 : f32
      %289 = vector.broadcast %cst_92 : f32 to vector<4x128xf32>
      %c0_93 = arith.constant 0 : index
      %c0_94 = arith.constant 0 : index
      %290 = vector.load %arg9[%c0_93, %c0_94] : memref<4x128xf32, #tpu.memory_space<vmem>>, vector<4x128xf32>
      tpu.vector_store %arg9[%c0_93, %c0_94], %289 {strides = array<i32>} : memref<4x128xf32, #tpu.memory_space<vmem>>, vector<4x128xf32>,
    } else {
    }
    %3 = arith.index_cast %arg1 : i32 to index
    %c0 = arith.constant 0 : index
    %c0_1 = arith.constant 0 : index
    %4 = vector.load %arg3[%3, %c0, %c0_1] : memref<1x64x256xbf16, #tpu.memory_space<vmem>>, vector<1x64x256xbf16>
    %5 = vector.shape_cast %4 : vector<1x64x256xbf16> to vector<64x256xbf16>
    %c0_2 = arith.constant 0 : index
    %c0_3 = arith.constant 0 : index
    %6 = vector.load %arg2[%c0_2, %c0_3] : memref<4x64xbf16, #tpu.memory_space<vmem>>, vector<4x64xbf16>
    %cst = arith.constant dense<0.000000e+00> : vector<4x256xf32>
    %7 = tpu.matmul %6, %5, %cst {dimension_numbers = #tpu.dot_dimension_numbers<[1], [0], [0], [1], [0, 0, 1, 1], [], []>} : vector<4x64xbf16>, vector<64x256xbf16>, vector<4x256xf32> -> vector<4x256xf32>
    %8 = vector.extract_strided_slice %7 {offsets = [0, 0], sizes = [4, 128], strides = [1, 1]} : vector<4x256xf32> to vector<4x128xf32>
    %9 = vector.extract_strided_slice %7 {offsets = [0, 128], sizes = [4, 128], strides = [1, 1]} : vector<4x256xf32> to vector<4x128xf32>
    %10 = arith.mulf %8, %8 : vector<4x128xf32>
    %11 = arith.mulf %9, %9 : vector<4x128xf32>
    %12 = arith.addf %10, %11 : vector<4x128xf32>
    %13 = tpu.iota {dimensions = array<i32: 1>} : vector<4x128xi32>
    %c128_i32 = arith.constant 128 : i32
    %14 = arith.muli %arg1, %c128_i32 : i32
    %15 = vector.broadcast %14 : i32 to vector<4x128xi32>
    %16 = arith.addi %13, %15 : vector<4x128xi32>
    %c31_i32 = arith.constant 31 : i32
    %17 = vector.broadcast %c31_i32 : i32 to vector<4x128xi32>
    %18 = arith.cmpi slt, %16, %17 : vector<4x128xi32>
    %cst_4 = arith.constant -1.000000e+00 : f32
    %19 = vector.broadcast %cst_4 : f32 to vector<4x128xf32>
    %20 = arith.select %18, %12, %19 : vector<4x128xi1>, vector<4x128xf32>
    %c0_5 = arith.constant 0 : index
    %c0_6 = arith.constant 0 : index
    %21 = vector.load %arg7[%c0_5, %c0_6] : memref<4x128xf32, #tpu.memory_space<vmem>>, vector<4x128xf32>
    %22 = tpu.concatenate %21, %20 in 1 : vector<4x128xf32>, vector<4x128xf32> -> vector<4x256xf32>
    %c0_7 = arith.constant 0 : index
    %c0_8 = arith.constant 0 : index
    %23 = vector.load %arg8[%c0_7, %c0_8] : memref<4x128xf32, #tpu.memory_space<vmem>>, vector<4x128xf32>
    %24 = tpu.concatenate %23, %8 in 1 : vector<4x128xf32>, vector<4x128xf32> -> vector<4x256xf32>
    %c0_9 = arith.constant 0 : index
    %c0_10 = arith.constant 0 : index
    %25 = vector.load %arg9[%c0_9, %c0_10] : memref<4x128xf32, #tpu.memory_space<vmem>>, vector<4x128xf32>
    %26 = tpu.concatenate %25, %9 in 1 : vector<4x128xf32>, vector<4x128xf32> -> vector<4x256xf32>
    %27 = tpu.iota {dimensions = array<i32: 1>} : vector<4x256xi32>
    %28 = arith.sitofp %27 : vector<4x256xi32> to vector<4x256xf32>
    %29 = tpu.iota {dimensions = array<i32: 1>} : vector<4x128xi32>
    %cst_11 = arith.constant -1.000000e+00 : f32
    %30 = vector.broadcast %cst_11 : f32 to vector<4x128xf32>
    %cst_12 = arith.constant 0.000000e+00 : f32
    %31 = vector.broadcast %cst_12 : f32 to vector<4x128xf32>
    %cst_13 = arith.constant 0.000000e+00 : f32
    %32 = vector.broadcast %cst_13 : f32 to vector<4x128xf32>
    %cst_14 = arith.constant dense<0xFF800000> : vector<4xf32>
    %33 = vector.multi_reduction <maximumf>, %22, %cst_14 [1] : vector<4x256xf32> to vector<4xf32>
    %34 = vector.shape_cast %33 : vector<4xf32> to vector<4x1xf32>
    %35 = vector.broadcast %34 : vector<4x1xf32> to vector<4x256xf32>
    %36 = arith.cmpf oeq, %22, %35 : vector<4x256xf32>
    %cst_15 = arith.constant 2.560000e+02 : f32
    %37 = vector.broadcast %cst_15 : f32 to vector<4x256xf32>
    %38 = arith.select %36, %28, %37 : vector<4x256xi1>, vector<4x256xf32>
    %cst_16 = arith.constant dense<0x7F800000> : vector<4xf32>
    %39 = vector.multi_reduction <minimumf>, %38, %cst_16 [1] : vector<4x256xf32> to vector<4xf32>
    %40 = vector.shape_cast %39 : vector<4xf32> to vector<4x1xf32>
    %41 = vector.broadcast %40 : vector<4x1xf32> to vector<4x256xf32>
    %42 = arith.cmpf oeq, %28, %41 : vector<4x256xf32>
    %cst_17 = arith.constant 0.000000e+00 : f32
    %43 = vector.broadcast %cst_17 : f32 to vector<4x256xf32>
    %44 = arith.select %42, %24, %43 : vector<4x256xi1>, vector<4x256xf32>
    %cst_18 = arith.constant dense<0.000000e+00> : vector<4xf32>
    %45 = vector.multi_reduction <add>, %44, %cst_18 [1] : vector<4x256xf32> to vector<4xf32>
    %46 = vector.shape_cast %45 : vector<4xf32> to vector<4x1xf32>
    %cst_19 = arith.constant 0.000000e+00 : f32
    %47 = vector.broadcast %cst_19 : f32 to vector<4x256xf32>
    %48 = arith.select %42, %26, %47 : vector<4x256xi1>, vector<4x256xf32>
    %cst_20 = arith.constant dense<0.000000e+00> : vector<4xf32>
    %49 = vector.multi_reduction <add>, %48, %cst_20 [1] : vector<4x256xf32> to vector<4xf32>
    %50 = vector.shape_cast %49 : vector<4xf32> to vector<4x1xf32>
    %c0_i32_21 = arith.constant 0 : i32
    %51 = vector.broadcast %c0_i32_21 : i32 to vector<4x128xi32>
    %52 = arith.cmpi eq, %29, %51 : vector<4x128xi32>
    %53 = vector.shape_cast %34 : vector<4x1xf32> to vector<4x1xf32>
    %54 = vector.broadcast %53 : vector<4x1xf32> to vector<4x128xf32>
    %55 = arith.select %52, %54, %30 : vector<4x128xi1>, vector<4x128xf32>
    %56 = vector.shape_cast %46 : vector<4x1xf32> to vector<4x1xf32>
    %57 = vector.broadcast %56 : vector<4x1xf32> to vector<4x128xf32>
    %58 = arith.select %52, %57, %31 : vector<4x128xi1>, vector<4x128xf32>
    %59 = vector.shape_cast %50 : vector<4x1xf32> to vector<4x1xf32>
    %60 = vector.broadcast %59 : vector<4x1xf32> to vector<4x128xf32>
    %61 = arith.select %52, %60, %32 : vector<4x128xi1>, vector<4x128xf32>
    %cst_22 = arith.constant -1.000000e+00 : f32
    %62 = vector.broadcast %cst_22 : f32 to vector<4x256xf32>
    %63 = arith.select %42, %62, %22 : vector<4x256xi1>, vector<4x256xf32>
    %cst_23 = arith.constant dense<0xFF800000> : vector<4xf32>
    %64 = vector.multi_reduction <maximumf>, %63, %cst_23 [1] : vector<4x256xf32> to vector<4xf32>
    %65 = vector.shape_cast %64 : vector<4xf32> to vector<4x1xf32>
    %66 = vector.broadcast %65 : vector<4x1xf32> to vector<4x256xf32>
    %67 = arith.cmpf oeq, %63, %66 : vector<4x256xf32>
    %cst_24 = arith.constant 2.560000e+02 : f32
    %68 = vector.broadcast %cst_24 : f32 to vector<4x256xf32>
    %69 = arith.select %67, %28, %68 : vector<4x256xi1>, vector<4x256xf32>
    %cst_25 = arith.constant dense<0x7F800000> : vector<4xf32>
    %70 = vector.multi_reduction <minimumf>, %69, %cst_25 [1] : vector<4x256xf32> to vector<4xf32>
    %71 = vector.shape_cast %70 : vector<4xf32> to vector<4x1xf32>
    %72 = vector.broadcast %71 : vector<4x1xf32> to vector<4x256xf32>
    %73 = arith.cmpf oeq, %28, %72 : vector<4x256xf32>
    %cst_26 = arith.constant 0.000000e+00 : f32
    %74 = vector.broadcast %cst_26 : f32 to vector<4x256xf32>
    %75 = arith.select %73, %24, %74 : vector<4x256xi1>, vector<4x256xf32>
    %cst_27 = arith.constant dense<0.000000e+00> : vector<4xf32>
    %76 = vector.multi_reduction <add>, %75, %cst_27 [1] : vector<4x256xf32> to vector<4xf32>
    %77 = vector.shape_cast %76 : vector<4xf32> to vector<4x1xf32>
    %cst_28 = arith.constant 0.000000e+00 : f32
    %78 = vector.broadcast %cst_28 : f32 to vector<4x256xf32>
    %79 = arith.select %73, %26, %78 : vector<4x256xi1>, vector<4x256xf32>
    %cst_29 = arith.constant dense<0.000000e+00> : vector<4xf32>
    %80 = vector.multi_reduction <add>, %79, %cst_29 [1] : vector<4x256xf32> to vector<4xf32>
    %81 = vector.shape_cast %80 : vector<4xf32> to vector<4x1xf32>
    %c1_i32 = arith.constant 1 : i32
    %82 = vector.broadcast %c1_i32 : i32 to vector<4x128xi32>
    %83 = arith.cmpi eq, %29, %82 : vector<4x128xi32>
    %84 = vector.shape_cast %65 : vector<4x1xf32> to vector<4x1xf32>
    %85 = vector.broadcast %84 : vector<4x1xf32> to vector<4x128xf32>
    %86 = arith.select %83, %85, %55 : vector<4x128xi1>, vector<4x128xf32>
    %87 = vector.shape_cast %77 : vector<4x1xf32> to vector<4x1xf32>
    %88 = vector.broadcast %87 : vector<4x1xf32> to vector<4x128xf32>
    %89 = arith.select %83, %88, %58 : vector<4x128xi1>, vector<4x128xf32>
    %90 = vector.shape_cast %81 : vector<4x1xf32> to vector<4x1xf32>
    %91 = vector.broadcast %90 : vector<4x1xf32> to vector<4x128xf32>
    %92 = arith.select %83, %91, %61 : vector<4x128xi1>, vector<4x128xf32>
    %cst_30 = arith.constant -1.000000e+00 : f32
    %93 = vector.broadcast %cst_30 : f32 to vector<4x256xf32>
    %94 = arith.select %73, %93, %63 : vector<4x256xi1>, vector<4x256xf32>
    %cst_31 = arith.constant dense<0xFF800000> : vector<4xf32>
    %95 = vector.multi_reduction <maximumf>, %94, %cst_31 [1] : vector<4x256xf32> to vector<4xf32>
    %96 = vector.shape_cast %95 : vector<4xf32> to vector<4x1xf32>
    %97 = vector.broadcast %96 : vector<4x1xf32> to vector<4x256xf32>
    %98 = arith.cmpf oeq, %94, %97 : vector<4x256xf32>
    %cst_32 = arith.constant 2.560000e+02 : f32
    %99 = vector.broadcast %cst_32 : f32 to vector<4x256xf32>
    %100 = arith.select %98, %28, %99 : vector<4x256xi1>, vector<4x256xf32>
    %cst_33 = arith.constant dense<0x7F800000> : vector<4xf32>
    %101 = vector.multi_reduction <minimumf>, %100, %cst_33 [1] : vector<4x256xf32> to vector<4xf32>
    %102 = vector.shape_cast %101 : vector<4xf32> to vector<4x1xf32>
    %103 = vector.broadcast %102 : vector<4x1xf32> to vector<4x256xf32>
    %104 = arith.cmpf oeq, %28, %103 : vector<4x256xf32>
    %cst_34 = arith.constant 0.000000e+00 : f32
    %105 = vector.broadcast %cst_34 : f32 to vector<4x256xf32>
    %106 = arith.select %104, %24, %105 : vector<4x256xi1>, vector<4x256xf32>
    %cst_35 = arith.constant dense<0.000000e+00> : vector<4xf32>
    %107 = vector.multi_reduction <add>, %106, %cst_35 [1] : vector<4x256xf32> to vector<4xf32>
    %108 = vector.shape_cast %107 : vector<4xf32> to vector<4x1xf32>
    %cst_36 = arith.constant 0.000000e+00 : f32
    %109 = vector.broadcast %cst_36 : f32 to vector<4x256xf32>
    %110 = arith.select %104, %26, %109 : vector<4x256xi1>, vector<4x256xf32>
    %cst_37 = arith.constant dense<0.000000e+00> : vector<4xf32>
    %111 = vector.multi_reduction <add>, %110, %cst_37 [1] : vector<4x256xf32> to vector<4xf32>
    %112 = vector.shape_cast %111 : vector<4xf32> to vector<4x1xf32>
    %c2_i32 = arith.constant 2 : i32
    %113 = vector.broadcast %c2_i32 : i32 to vector<4x128xi32>
    %114 = arith.cmpi eq, %29, %113 : vector<4x128xi32>
    %115 = vector.shape_cast %96 : vector<4x1xf32> to vector<4x1xf32>
    %116 = vector.broadcast %115 : vector<4x1xf32> to vector<4x128xf32>
    %117 = arith.select %114, %116, %86 : vector<4x128xi1>, vector<4x128xf32>
    %118 = vector.shape_cast %108 : vector<4x1xf32> to vector<4x1xf32>
    %119 = vector.broadcast %118 : vector<4x1xf32> to vector<4x128xf32>
    %120 = arith.select %114, %119, %89 : vector<4x128xi1>, vector<4x128xf32>
    %121 = vector.shape_cast %112 : vector<4x1xf32> to vector<4x1xf32>
    %122 = vector.broadcast %121 : vector<4x1xf32> to vector<4x128xf32>
    %123 = arith.select %114, %122, %92 : vector<4x128xi1>, vector<4x128xf32>
    %cst_38 = arith.constant -1.000000e+00 : f32
    %124 = vector.broadcast %cst_38 : f32 to vector<4x256xf32>
    %125 = arith.select %104, %124, %94 : vector<4x256xi1>, vector<4x256xf32>
    %cst_39 = arith.constant dense<0xFF800000> : vector<4xf32>
    %126 = vector.multi_reduction <maximumf>, %125, %cst_39 [1] : vector<4x256xf32> to vector<4xf32>
    %127 = vector.shape_cast %126 : vector<4xf32> to vector<4x1xf32>
    %128 = vector.broadcast %127 : vector<4x1xf32> to vector<4x256xf32>
    %129 = arith.cmpf oeq, %125, %128 : vector<4x256xf32>
    %cst_40 = arith.constant 2.560000e+02 : f32
    %130 = vector.broadcast %cst_40 : f32 to vector<4x256xf32>
    %131 = arith.select %129, %28, %130 : vector<4x256xi1>, vector<4x256xf32>
    %cst_41 = arith.constant dense<0x7F800000> : vector<4xf32>
    %132 = vector.multi_reduction <minimumf>, %131, %cst_41 [1] : vector<4x256xf32> to vector<4xf32>
    %133 = vector.shape_cast %132 : vector<4xf32> to vector<4x1xf32>
    %134 = vector.broadcast %133 : vector<4x1xf32> to vector<4x256xf32>
    %135 = arith.cmpf oeq, %28, %134 : vector<4x256xf32>
    %cst_42 = arith.constant 0.000000e+00 : f32
    %136 = vector.broadcast %cst_42 : f32 to vector<4x256xf32>
    %137 = arith.select %135, %24, %136 : vector<4x256xi1>, vector<4x256xf32>
    %cst_43 = arith.constant dense<0.000000e+00> : vector<4xf32>
    %138 = vector.multi_reduction <add>, %137, %cst_43 [1] : vector<4x256xf32> to vector<4xf32>
    %139 = vector.shape_cast %138 : vector<4xf32> to vector<4x1xf32>
    %cst_44 = arith.constant 0.000000e+00 : f32
    %140 = vector.broadcast %cst_44 : f32 to vector<4x256xf32>
    %141 = arith.select %135, %26, %140 : vector<4x256xi1>, vector<4x256xf32>
    %cst_45 = arith.constant dense<0.000000e+00> : vector<4xf32>
    %142 = vector.multi_reduction <add>, %141, %cst_45 [1] : vector<4x256xf32> to vector<4xf32>
    %143 = vector.shape_cast %142 : vector<4xf32> to vector<4x1xf32>
    %c3_i32 = arith.constant 3 : i32
    %144 = vector.broadcast %c3_i32 : i32 to vector<4x128xi32>
    %145 = arith.cmpi eq, %29, %144 : vector<4x128xi32>
    %146 = vector.shape_cast %127 : vector<4x1xf32> to vector<4x1xf32>
    %147 = vector.broadcast %146 : vector<4x1xf32> to vector<4x128xf32>
    %148 = arith.select %145, %147, %117 : vector<4x128xi1>, vector<4x128xf32>
    %149 = vector.shape_cast %139 : vector<4x1xf32> to vector<4x1xf32>
    %150 = vector.broadcast %149 : vector<4x1xf32> to vector<4x128xf32>
    %151 = arith.select %145, %150, %120 : vector<4x128xi1>, vector<4x128xf32>
    %152 = vector.shape_cast %143 : vector<4x1xf32> to vector<4x1xf32>
    %153 = vector.broadcast %152 : vector<4x1xf32> to vector<4x128xf32>
    %154 = arith.select %145, %153, %123 : vector<4x128xi1>, vector<4x128xf32>
    %cst_46 = arith.constant -1.000000e+00 : f32
    %155 = vector.broadcast %cst_46 : f32 to vector<4x256xf32>
    %156 = arith.select %135, %155, %125 : vector<4x256xi1>, vector<4x256xf32>
    %cst_47 = arith.constant dense<0xFF800000> : vector<4xf32>
    %157 = vector.multi_reduction <maximumf>, %156, %cst_47 [1] : vector<4x256xf32> to vector<4xf32>
    %158 = vector.shape_cast %157 : vector<4xf32> to vector<4x1xf32>
    %159 = vector.broadcast %158 : vector<4x1xf32> to vector<4x256xf32>
    %160 = arith.cmpf oeq, %156, %159 : vector<4x256xf32>
    %cst_48 = arith.constant 2.560000e+02 : f32
    %161 = vector.broadcast %cst_48 : f32 to vector<4x256xf32>
    %162 = arith.select %160, %28, %161 : vector<4x256xi1>, vector<4x256xf32>
    %cst_49 = arith.constant dense<0x7F800000> : vector<4xf32>
    %163 = vector.multi_reduction <minimumf>, %162, %cst_49 [1] : vector<4x256xf32> to vector<4xf32>
    %164 = vector.shape_cast %163 : vector<4xf32> to vector<4x1xf32>
    %165 = vector.broadcast %164 : vector<4x1xf32> to vector<4x256xf32>
    %166 = arith.cmpf oeq, %28, %165 : vector<4x256xf32>
    %cst_50 = arith.constant 0.000000e+00 : f32
    %167 = vector.broadcast %cst_50 : f32 to vector<4x256xf32>
    %168 = arith.select %166, %24, %167 : vector<4x256xi1>, vector<4x256xf32>
    %cst_51 = arith.constant dense<0.000000e+00> : vector<4xf32>
    %169 = vector.multi_reduction <add>, %168, %cst_51 [1] : vector<4x256xf32> to vector<4xf32>
    %170 = vector.shape_cast %169 : vector<4xf32> to vector<4x1xf32>
    %cst_52 = arith.constant 0.000000e+00 : f32
    %171 = vector.broadcast %cst_52 : f32 to vector<4x256xf32>
    %172 = arith.select %166, %26, %171 : vector<4x256xi1>, vector<4x256xf32>
    %cst_53 = arith.constant dense<0.000000e+00> : vector<4xf32>
    %173 = vector.multi_reduction <add>, %172, %cst_53 [1] : vector<4x256xf32> to vector<4xf32>
    %174 = vector.shape_cast %173 : vector<4xf32> to vector<4x1xf32>
    %c4_i32 = arith.constant 4 : i32
    %175 = vector.broadcast %c4_i32 : i32 to vector<4x128xi32>
    %176 = arith.cmpi eq, %29, %175 : vector<4x128xi32>
    %177 = vector.shape_cast %158 : vector<4x1xf32> to vector<4x1xf32>
    %178 = vector.broadcast %177 : vector<4x1xf32> to vector<4x128xf32>
    %179 = arith.select %176, %178, %148 : vector<4x128xi1>, vector<4x128xf32>
    %180 = vector.shape_cast %170 : vector<4x1xf32> to vector<4x1xf32>
    %181 = vector.broadcast %180 : vector<4x1xf32> to vector<4x128xf32>
    %182 = arith.select %176, %181, %151 : vector<4x128xi1>, vector<4x128xf32>
    %183 = vector.shape_cast %174 : vector<4x1xf32> to vector<4x1xf32>
    %184 = vector.broadcast %183 : vector<4x1xf32> to vector<4x128xf32>
    %185 = arith.select %176, %184, %154 : vector<4x128xi1>, vector<4x128xf32>
    %cst_54 = arith.constant -1.000000e+00 : f32
    %186 = vector.broadcast %cst_54 : f32 to vector<4x256xf32>
    %187 = arith.select %166, %186, %156 : vector<4x256xi1>, vector<4x256xf32>
    %cst_55 = arith.constant dense<0xFF800000> : vector<4xf32>
    %188 = vector.multi_reduction <maximumf>, %187, %cst_55 [1] : vector<4x256xf32> to vector<4xf32>
    %189 = vector.shape_cast %188 : vector<4xf32> to vector<4x1xf32>
    %190 = vector.broadcast %189 : vector<4x1xf32> to vector<4x256xf32>
    %191 = arith.cmpf oeq, %187, %190 : vector<4x256xf32>
    %cst_56 = arith.constant 2.560000e+02 : f32
    %192 = vector.broadcast %cst_56 : f32 to vector<4x256xf32>
    %193 = arith.select %191, %28, %192 : vector<4x256xi1>, vector<4x256xf32>
    %cst_57 = arith.constant dense<0x7F800000> : vector<4xf32>
    %194 = vector.multi_reduction <minimumf>, %193, %cst_57 [1] : vector<4x256xf32> to vector<4xf32>
    %195 = vector.shape_cast %194 : vector<4xf32> to vector<4x1xf32>
    %196 = vector.broadcast %195 : vector<4x1xf32> to vector<4x256xf32>
    %197 = arith.cmpf oeq, %28, %196 : vector<4x256xf32>
    %cst_58 = arith.constant 0.000000e+00 : f32
    %198 = vector.broadcast %cst_58 : f32 to vector<4x256xf32>
    %199 = arith.select %197, %24, %198 : vector<4x256xi1>, vector<4x256xf32>
    %cst_59 = arith.constant dense<0.000000e+00> : vector<4xf32>
    %200 = vector.multi_reduction <add>, %199, %cst_59 [1] : vector<4x256xf32> to vector<4xf32>
    %201 = vector.shape_cast %200 : vector<4xf32> to vector<4x1xf32>
    %cst_60 = arith.constant 0.000000e+00 : f32
    %202 = vector.broadcast %cst_60 : f32 to vector<4x256xf32>
    %203 = arith.select %197, %26, %202 : vector<4x256xi1>, vector<4x256xf32>
    %cst_61 = arith.constant dense<0.000000e+00> : vector<4xf32>
    %204 = vector.multi_reduction <add>, %203, %cst_61 [1] : vector<4x256xf32> to vector<4xf32>
    %205 = vector.shape_cast %204 : vector<4xf32> to vector<4x1xf32>
    %c5_i32 = arith.constant 5 : i32
    %206 = vector.broadcast %c5_i32 : i32 to vector<4x128xi32>
    %207 = arith.cmpi eq, %29, %206 : vector<4x128xi32>
    %208 = vector.shape_cast %189 : vector<4x1xf32> to vector<4x1xf32>
    %209 = vector.broadcast %208 : vector<4x1xf32> to vector<4x128xf32>
    %210 = arith.select %207, %209, %179 : vector<4x128xi1>, vector<4x128xf32>
    %211 = vector.shape_cast %201 : vector<4x1xf32> to vector<4x1xf32>
    %212 = vector.broadcast %211 : vector<4x1xf32> to vector<4x128xf32>
    %213 = arith.select %207, %212, %182 : vector<4x128xi1>, vector<4x128xf32>
    %214 = vector.shape_cast %205 : vector<4x1xf32> to vector<4x1xf32>
    %215 = vector.broadcast %214 : vector<4x1xf32> to vector<4x128xf32>
    %216 = arith.select %207, %215, %185 : vector<4x128xi1>, vector<4x128xf32>
    %cst_62 = arith.constant -1.000000e+00 : f32
    %217 = vector.broadcast %cst_62 : f32 to vector<4x256xf32>
    %218 = arith.select %197, %217, %187 : vector<4x256xi1>, vector<4x256xf32>
    %cst_63 = arith.constant dense<0xFF800000> : vector<4xf32>
    %219 = vector.multi_reduction <maximumf>, %218, %cst_63 [1] : vector<4x256xf32> to vector<4xf32>
    %220 = vector.shape_cast %219 : vector<4xf32> to vector<4x1xf32>
    %221 = vector.broadcast %220 : vector<4x1xf32> to vector<4x256xf32>
    %222 = arith.cmpf oeq, %218, %221 : vector<4x256xf32>
    %cst_64 = arith.constant 2.560000e+02 : f32
    %223 = vector.broadcast %cst_64 : f32 to vector<4x256xf32>
    %224 = arith.select %222, %28, %223 : vector<4x256xi1>, vector<4x256xf32>
    %cst_65 = arith.constant dense<0x7F800000> : vector<4xf32>
    %225 = vector.multi_reduction <minimumf>, %224, %cst_65 [1] : vector<4x256xf32> to vector<4xf32>
    %226 = vector.shape_cast %225 : vector<4xf32> to vector<4x1xf32>
    %227 = vector.broadcast %226 : vector<4x1xf32> to vector<4x256xf32>
    %228 = arith.cmpf oeq, %28, %227 : vector<4x256xf32>
    %cst_66 = arith.constant 0.000000e+00 : f32
    %229 = vector.broadcast %cst_66 : f32 to vector<4x256xf32>
    %230 = arith.select %228, %24, %229 : vector<4x256xi1>, vector<4x256xf32>
    %cst_67 = arith.constant dense<0.000000e+00> : vector<4xf32>
    %231 = vector.multi_reduction <add>, %230, %cst_67 [1] : vector<4x256xf32> to vector<4xf32>
    %232 = vector.shape_cast %231 : vector<4xf32> to vector<4x1xf32>
    %cst_68 = arith.constant 0.000000e+00 : f32
    %233 = vector.broadcast %cst_68 : f32 to vector<4x256xf32>
    %234 = arith.select %228, %26, %233 : vector<4x256xi1>, vector<4x256xf32>
    %cst_69 = arith.constant dense<0.000000e+00> : vector<4xf32>
    %235 = vector.multi_reduction <add>, %234, %cst_69 [1] : vector<4x256xf32> to vector<4xf32>
    %236 = vector.shape_cast %235 : vector<4xf32> to vector<4x1xf32>
    %c6_i32 = arith.constant 6 : i32
    %237 = vector.broadcast %c6_i32 : i32 to vector<4x128xi32>
    %238 = arith.cmpi eq, %29, %237 : vector<4x128xi32>
    %239 = vector.shape_cast %220 : vector<4x1xf32> to vector<4x1xf32>
    %240 = vector.broadcast %239 : vector<4x1xf32> to vector<4x128xf32>
    %241 = arith.select %238, %240, %210 : vector<4x128xi1>, vector<4x128xf32>
    %242 = vector.shape_cast %232 : vector<4x1xf32> to vector<4x1xf32>
    %243 = vector.broadcast %242 : vector<4x1xf32> to vector<4x128xf32>
    %244 = arith.select %238, %243, %213 : vector<4x128xi1>, vector<4x128xf32>
    %245 = vector.shape_cast %236 : vector<4x1xf32> to vector<4x1xf32>
    %246 = vector.broadcast %245 : vector<4x1xf32> to vector<4x128xf32>
    %247 = arith.select %238, %246, %216 : vector<4x128xi1>, vector<4x128xf32>
    %cst_70 = arith.constant -1.000000e+00 : f32
    %248 = vector.broadcast %cst_70 : f32 to vector<4x256xf32>
    %249 = arith.select %228, %248, %218 : vector<4x256xi1>, vector<4x256xf32>
    %cst_71 = arith.constant dense<0xFF800000> : vector<4xf32>
    %250 = vector.multi_reduction <maximumf>, %249, %cst_71 [1] : vector<4x256xf32> to vector<4xf32>
    %251 = vector.shape_cast %250 : vector<4xf32> to vector<4x1xf32>
    %252 = vector.broadcast %251 : vector<4x1xf32> to vector<4x256xf32>
    %253 = arith.cmpf oeq, %249, %252 : vector<4x256xf32>
    %cst_72 = arith.constant 2.560000e+02 : f32
    %254 = vector.broadcast %cst_72 : f32 to vector<4x256xf32>
    %255 = arith.select %253, %28, %254 : vector<4x256xi1>, vector<4x256xf32>
    %cst_73 = arith.constant dense<0x7F800000> : vector<4xf32>
    %256 = vector.multi_reduction <minimumf>, %255, %cst_73 [1] : vector<4x256xf32> to vector<4xf32>
    %257 = vector.shape_cast %256 : vector<4xf32> to vector<4x1xf32>
    %258 = vector.broadcast %257 : vector<4x1xf32> to vector<4x256xf32>
    %259 = arith.cmpf oeq, %28, %258 : vector<4x256xf32>
    %cst_74 = arith.constant 0.000000e+00 : f32
    %260 = vector.broadcast %cst_74 : f32 to vector<4x256xf32>
    %261 = arith.select %259, %24, %260 : vector<4x256xi1>, vector<4x256xf32>
    %cst_75 = arith.constant dense<0.000000e+00> : vector<4xf32>
    %262 = vector.multi_reduction <add>, %261, %cst_75 [1] : vector<4x256xf32> to vector<4xf32>
    %263 = vector.shape_cast %262 : vector<4xf32> to vector<4x1xf32>
    %cst_76 = arith.constant 0.000000e+00 : f32
    %264 = vector.broadcast %cst_76 : f32 to vector<4x256xf32>
    %265 = arith.select %259, %26, %264 : vector<4x256xi1>, vector<4x256xf32>
    %cst_77 = arith.constant dense<0.000000e+00> : vector<4xf32>
    %266 = vector.multi_reduction <add>, %265, %cst_77 [1] : vector<4x256xf32> to vector<4xf32>
    %267 = vector.shape_cast %266 : vector<4xf32> to vector<4x1xf32>
    %c7_i32 = arith.constant 7 : i32
    %268 = vector.broadcast %c7_i32 : i32 to vector<4x128xi32>
    %269 = arith.cmpi eq, %29, %268 : vector<4x128xi32>
    %270 = vector.shape_cast %251 : vector<4x1xf32> to vector<4x1xf32>
    %271 = vector.broadcast %270 : vector<4x1xf32> to vector<4x128xf32>
    %272 = arith.select %269, %271, %241 : vector<4x128xi1>, vector<4x128xf32>
    %273 = vector.shape_cast %263 : vector<4x1xf32> to vector<4x1xf32>
    %274 = vector.broadcast %273 : vector<4x1xf32> to vector<4x128xf32>
    %275 = arith.select %269, %274, %244 : vector<4x128xi1>, vector<4x128xf32>
    %276 = vector.shape_cast %267 : vector<4x1xf32> to vector<4x1xf32>
    %277 = vector.broadcast %276 : vector<4x1xf32> to vector<4x128xf32>
    %278 = arith.select %269, %277, %247 : vector<4x128xi1>, vector<4x128xf32>
    %c0_78 = arith.constant 0 : index
    %c0_79 = arith.constant 0 : index
    %279 = vector.load %arg7[%c0_78, %c0_79] : memref<4x128xf32, #tpu.memory_space<vmem>>, vector<4x128xf32>
    tpu.vector_store %arg7[%c0_78, %c0_79], %272 {strides = array<i32>} : memref<4x128xf32, #tpu.memory_space<vmem>>, vector<4x128xf32>,
    %c0_80 = arith.constant 0 : index
    %c0_81 = arith.constant 0 : index
    %280 = vector.load %arg8[%c0_80, %c0_81] : memref<4x128xf32, #tpu.memory_space<vmem>>, vector<4x128xf32>
    tpu.vector_store %arg8[%c0_80, %c0_81], %275 {strides = array<i32>} : memref<4x128xf32, #tpu.memory_space<vmem>>, vector<4x128xf32>,
    %c0_82 = arith.constant 0 : index
    %c0_83 = arith.constant 0 : index
    %281 = vector.load %arg9[%c0_82, %c0_83] : memref<4x128xf32, #tpu.memory_space<vmem>>, vector<4x128xf32>
    tpu.vector_store %arg9[%c0_82, %c0_83], %278 {strides = array<i32>} : memref<4x128xf32, #tpu.memory_space<vmem>>, vector<4x128xf32>,
    %c0_i32_84 = arith.constant 0 : i32
    %282 = arith.cmpi eq, %arg1, %c0_i32_84 : i32
    %283 = arith.extui %282 : i1 to i32
    %c0_i32_85 = arith.constant 0 : i32
    %284 = arith.cmpi ne, %283, %c0_i32_85 : i32
    scf.if %284 {
      %285 = vector.extract_strided_slice %272 {offsets = [0, 0], sizes = [4, 8], strides = [1, 1]} : vector<4x128xf32> to vector<4x8xf32>
      %cst_86 = arith.constant 0.000000e+00 : f32
      %286 = vector.broadcast %cst_86 : f32 to vector<4x8xf32>
      %287 = arith.maximumf %285, %286 : vector<4x8xf32>
      %288 = math.sqrt %287 : vector<4x8xf32>
      %c0_87 = arith.constant 0 : index
      %c0_88 = arith.constant 0 : index
      %289 = vector.load %arg4[%c0_87, %c0_88] : memref<4x8xf32, #tpu.memory_space<vmem>>, vector<4x8xf32>
      tpu.vector_store %arg4[%c0_87, %c0_88], %288 {strides = array<i32>} : memref<4x8xf32, #tpu.memory_space<vmem>>, vector<4x8xf32>,
      %290 = vector.extract_strided_slice %275 {offsets = [0, 0], sizes = [4, 8], strides = [1, 1]} : vector<4x128xf32> to vector<4x8xf32>
      %c0_89 = arith.constant 0 : index
      %c0_90 = arith.constant 0 : index
      %291 = vector.load %arg5[%c0_89, %c0_90] : memref<4x8xf32, #tpu.memory_space<vmem>>, vector<4x8xf32>
      tpu.vector_store %arg5[%c0_89, %c0_90], %290 {strides = array<i32>} : memref<4x8xf32, #tpu.memory_space<vmem>>, vector<4x8xf32>,
      %292 = vector.extract_strided_slice %278 {offsets = [0, 0], sizes = [4, 8], strides = [1, 1]} : vector<4x128xf32> to vector<4x8xf32>
      %c0_91 = arith.constant 0 : index
      %c0_92 = arith.constant 0 : index
      %293 = vector.load %arg6[%c0_91, %c0_92] : memref<4x8xf32, #tpu.memory_space<vmem>>, vector<4x8xf32>
      tpu.vector_store %arg6[%c0_91, %c0_92], %292 {strides = array<i32>} : memref<4x8xf32, #tpu.memory_space<vmem>>, vector<4x8xf32>,
    } else {
    }
    return
  }
  func.func @transform_0(%arg0: i32, %arg1: i32) -> (i32, i32) {
    %c0_i32 = arith.constant 0 : i32
    %c0_i32_0 = arith.constant 0 : i32
    return %arg0, %c0_i32 : i32, i32
  }
  func.func @transform_1(%arg0: i32, %arg1: i32) -> (i32, i32, i32) {
    %c0_i32 = arith.constant 0 : i32
    %c0_i32_0 = arith.constant 0 : i32
    %c0_i32_1 = arith.constant 0 : i32
    %c0_i32_2 = arith.constant 0 : i32
    return %c0_i32, %c0_i32_0, %c0_i32_1 : i32, i32, i32
  }
  func.func @transform_2(%arg0: i32, %arg1: i32) -> (i32, i32) {
    %c0_i32 = arith.constant 0 : i32
    %c0_i32_0 = arith.constant 0 : i32
    return %arg0, %c0_i32 : i32, i32
  }
  func.func @transform_3(%arg0: i32, %arg1: i32) -> (i32, i32) {
    %c0_i32 = arith.constant 0 : i32
    %c0_i32_0 = arith.constant 0 : i32
    return %arg0, %c0_i32 : i32, i32
  }
  func.func @transform_4(%arg0: i32, %arg1: i32) -> (i32, i32) {
    %c0_i32 = arith.constant 0 : i32
    %c0_i32_0 = arith.constant 0 : i32
    return %arg0, %c0_i32 : i32, i32
  }
}

</mosaic_0001>

<bundles_post_ra>
// kernel: tpu_custom_call.1
= control target key start
LH: loop header
LB: loop body
LE: loop exit
PB: predicated region body
PF: predicated region fallthrough
CT: control target
= control target key end

     0   :  { %10 = vsyncpa [#allocation6], 0  ;;  %s982_s0 = inlined_call_operand.hbm [shape: bf16[4,64], index: 0, kind: input, shape index: {}]   ;;  %s983_s1 = inlined_call_operand.hbm [shape: bf16[1,64,256], index: 1, kind: input, shape index: {}]   ;;  %s984_s2 = inlined_call_operand.hbm [shape: f32[4,8], index: 2, kind: output, shape index: {0}]   ;;  %s985_s3 = inlined_call_operand.hbm [shape: f32[4,8], index: 3, kind: output, shape index: {1}]   ;;  %s986_s4 = inlined_call_operand.hbm [shape: f32[4,8], index: 4, kind: output, shape index: {2}]  }
   0x1   :  { %11 = vsyncpa [#allocation9], 0 }
   0x2   :  { %12 = vsyncpa [#allocation7], 0 }
   0x3   :  { %13 = vsyncpa [#allocation12], 0  ;;  %s652_s15 = smov [#allocation5]   ;;  %s653_s17 = smov [#allocation8]  }
   0x4   :  { %s20_s16 = sshll.u32 %s652_s15, 4  ;;  %s29_s18 = sshll.u32 %s653_s17, 4  ;;  %s21_s16 = int_to_ptr.vmem [resolvable:$true] %s20_s16  ;;  %s30_s18 = int_to_ptr.vmem [resolvable:$true] %s29_s18 }
   0x5   :  { %s552_s19 = scalar_lea.vmem %s21_s16, 32  ;;  %p557_p1 = scmp.lt.s32.totalorder %s21_s16, %s21_s16 }
   0x6   :  { %p553_p0 = scmp.ne.s32.totalorder %s21_s16, %s552_s19  ;;  %p558_p2 = scmp.lt.s32.totalorder %s552_s19, %s552_s19 }
   0x8   :  { %p559_p3 = por %p558_p2, %p557_p1 }
   0xa   :  { %p560_p4 = pnand %p559_p3, %p553_p0 }
   0xc   :  { %563 = shalt.err (!%p560_p4)
}
   0xd   :  { %23 = dma.hbm_to_vmem [thread:$0]  %s982_s0, 32, %s21_s16, [#allocation6]  }
   0xe   :  { %s572_s22 = scalar_lea.vmem %s30_s18, 1024  ;;  %p577_p6 = scmp.lt.s32.totalorder %s30_s18, %s30_s18 }
   0xf   :  { %p573_p5 = scmp.ne.s32.totalorder %s30_s18, %s572_s22  ;;  %p578_p7 = scmp.lt.s32.totalorder %s572_s22, %s572_s22 }
  0x11   :  { %p579_p8 = por %p578_p7, %p577_p6 }
  0x13   :  { %p580_p9 = pnand %p579_p8, %p573_p5 }
  0x15   :  { %583 = shalt.err (!%p580_p9)
}
  0x16   :  { %s654_s23 = smov 128   ;;  %s655_s24 = smov 8  }
  0x17   :  { %35 = dma.hbm_to_vmem [thread:$0]  %s983_s1, 1024, %s30_s18, [#allocation9], %s654_s23, %s654_s23, %s655_s24  }
  0x18   :  { %644 = dma.done.wait [#allocation6], 32  }
  0x19   :  { %645 = vsyncadd [#allocation6], 4294967264 }
  0x1a   :  { %646 = dma.done.wait [#allocation9], 1024  }
  0x1b   :  { %647 = vsyncadd [#allocation9], 4294966272  ;;  %v656_v0 = vmov 0   ;;  %v530_v1 = vld [vmem:[#allocation8 + $0x34] ss:$8 sps:$4 sm:$0xff]   ;;  %vm102_vm0 = vcmask 523264   ;;  %v150_v11 = vlaneseq }
  0x1c   :  { %138 = vmatprep.mubr.bf16.mxu0 %v656_v0  ;;  %v532_v2 = vld [vmem:[#allocation8 + $0x30] ss:$8 sps:$4 sm:$0xff]   ;;  %114 = vmatprep.subr.bf16.mxu0 %v530_v1  ;;  %v533_v3 = vld [vmem:[#allocation8 + $0x24] ss:$8 sps:$4 sm:$0xff]   ;;  %v535_v4 = vld [vmem:[#allocation8 + $0x20] ss:$8 sps:$4 sm:$0xff]  }
  0x1d   :  { %115 = vmatpush1.bf16.msra.mxu0 %v532_v2  ;;  %v536_v5 = vld [vmem:[#allocation8 + $0x14] ss:$8 sps:$4 sm:$0xff]   ;;  %v538_v6 = vld [vmem:[#allocation8 + $0x10] ss:$8 sps:$4 sm:$0xff]   ;;  %v539_v7 = vld [vmem:[#allocation8 + $0x4] ss:$8 sps:$4 sm:$0xff]  }
  0x1e   :  { %116 = vmatprep.subr.bf16.mxu0 %v533_v3  ;;  %v541_v8 = vld [vmem:[#allocation8] ss:$8 sps:$4 sm:$0xff]   ;;  %v61_v9 = vld [vmem:[#allocation5] sm:$0x3]  ;;  %v657_v10 = vmov -1.0   ;;  %v695_v13 = vand.u32 127, %v150_v11 }
  0x1f   :  { %47 = vst [vmem:[#allocation2] sm:$0xf] %v657_v10  ;;  %vm163_vm1 = vcmask 1043456   ;;  %v658_v34 = vmov 0.0   ;;  %s659_s0 = smov [#allocation10]  }
  0x20   :  { %vm155_vm2 = vcmp.lt.s32.totalorder %v695_v13, 31  ;;  %v160_v25 = vadd.s32 128, %v695_v13  ;;  %v708_v26 = vcvt.s32.f32 %v695_v13  ;;  %48 = vst [vmem:[#allocation3] sm:$0xf] %v658_v34  ;;  %49 = vst [vmem:[#allocation4] sm:$0xf] %v658_v34 }
  0x21   :  { %117 = vmatpush1.bf16.msra.mxu0 %v535_v4  ;;  %s474_s1 = sshll.u32 %s659_s0, 4  ;;  %s475_s1 = int_to_ptr.vmem [resolvable:$true] %s474_s1 }
  0x22   :  { %118 = vmatprep.subr.bf16.mxu0 %v536_v5  ;;  %v710_v27 = vcvt.s32.f32 %v160_v25  ;;  %s584_s27 = scalar_lea.vmem %s475_s1, 64  ;;  %p589_p11 = scmp.lt.s32.totalorder %s475_s1, %s475_s1 }
  0x23   :  { %p585_p10 = scmp.ne.s32.totalorder %s475_s1, %s584_s27  ;;  %p590_p12 = scmp.lt.s32.totalorder %s584_s27, %s584_s27 }
  0x25   :  { %119 = vmatpush1.bf16.msra.mxu0 %v538_v6  ;;  %p591_p13 = por %p590_p12, %p589_p11 }
  0x26   :  { %120 = vmatprep.subr.bf16.mxu0 %v539_v7  ;;  %v157_v17 = vld [vmem:[#allocation2] sm:$0xf] }
  0x27   :  { %v164_v21 = vsel %vm163_vm1, %v157_v17, -inf  ;;  %v720_v35 = vld [vmem:[#allocation3] sm:$0xf]  ;;  %v724_v37 = vld [vmem:[#allocation4] sm:$0xf]  ;;  %p592_p0 = pnand %p591_p13, %p585_p10 }
  0x29   :  { %121 = vmatpush1.bf16.msra.mxu0 %v541_v8 }
  0x2c   :  { %519 = vmatmul.mubr.msk.bf16.vlgmr.msra.gmra.mxu0 %vm102_vm0, %v61_v9 }
  0xec   :  { %v693_v12 = vpop.f32.mrf.mxu0 }
  0xed   :  { %v147_v15 = vmul.f32 %v693_v12, %v693_v12 }
  0xee   :  { %v697_v14 = vpop.f32.mrf.mxu0 }
  0xef   :  { %v148_v16 = vmul.f32 %v697_v14, %v697_v14 }
  0xf0   :  { %v144_v18 = vpop.f32.mrf.mxu0 }
  0xf1   :  { %v149_v19 = vadd.f32 %v148_v16, %v147_v15 }
  0xf2   :  { %v145_v20 = vpop.f32.mrf.mxu0 }
  0xf3   :  { %v156_v22 = vsel %vm155_vm2, %v149_v19, -1.0 }
  0xf4   :  { %v165_v23 = vsel %vm163_vm1, %v156_v22, -inf }
  0xf5   :  { %v166_v24 = vmax.f32 %v164_v21, %v165_v23 }
  0xf7   :  { %167 = vmax.xlane.f32.xlu0 %v166_v24 }
 0x180   :  { %v712_v28 = vpop.xlane.xlu0 %167 }
 0x181   :  { %vm169_vm3 = vcmp.eq.f32.partialorder %v157_v17, %v712_v28  ;;  %vm170_vm4 = vcmp.eq.f32.partialorder %v156_v22, %v712_v28 }
 0x182   :  { %v171_v29 = vsel %vm169_vm3, %v708_v26, 256.0  ;;  %v172_v30 = vsel %vm170_vm4, %v710_v27, 256.0 }
 0x183   :  { %v173_v31 = vsel %vm163_vm1, %v171_v29, inf  ;;  %v174_v32 = vsel %vm163_vm1, %v172_v30, inf }
 0x184   :  { %v175_v33 = vmin.f32 %v173_v31, %v174_v32 }
 0x186   :  { %176 = vmin.xlane.f32.xlu0 %v175_v33 }
 0x20f   :  { %v177_v36 = vpop.xlane.xlu0 %176 }
 0x210   :  { %vm178_vm5 = vcmp.eq.f32.partialorder %v708_v26, %v177_v36  ;;  %vm179_vm6 = vcmp.eq.f32.partialorder %v710_v27, %v177_v36 }
 0x211   :  { %v198_v38 = vsel %vm178_vm5, -1.0, %v157_v17  ;;  %v199_v39 = vsel %vm179_vm6, -1.0, %v156_v22  ;;  %v180_v40 = vsel %vm178_vm5, %v720_v35, 0.0  ;;  %v181_v41 = vsel %vm179_vm6, %v693_v12, 0.0 }
 0x212   :  { %v200_v42 = vsel %vm163_vm1, %v198_v38, -inf  ;;  %v201_v43 = vsel %vm163_vm1, %v199_v39, -inf  ;;  %v182_v44 = vsel %vm163_vm1, %v180_v40, 0.0  ;;  %v183_v45 = vsel %vm163_vm1, %v181_v41, 0.0 }
 0x213   :  { %v202_v46 = vmax.f32 %v200_v42, %v201_v43  ;;  %v732_v47 = vadd.f32 %v183_v45, %v182_v44  ;;  %v187_v48 = vsel %vm178_vm5, %v724_v37, 0.0  ;;  %v188_v49 = vsel %vm179_vm6, %v697_v14, 0.0 }
 0x214   :  { %v189_v50 = vsel %vm163_vm1, %v187_v48, 0.0  ;;  %v190_v51 = vsel %vm163_vm1, %v188_v49, 0.0 }
 0x215   :  { %203 = vmax.xlane.f32.xlu1 %v202_v46  ;;  %v738_v52 = vadd.f32 %v190_v51, %v189_v50 }
 0x29e   :  { %v740_v53 = vpop.xlane.xlu1 %203 }
 0x29f   :  { %vm205_vm7 = vcmp.eq.f32.partialorder %v198_v38, %v740_v53  ;;  %vm206_vm8 = vcmp.eq.f32.partialorder %v199_v39, %v740_v53 }
 0x2a0   :  { %v207_v54 = vsel %vm205_vm7, %v708_v26, 256.0  ;;  %v208_v55 = vsel %vm206_vm8, %v710_v27, 256.0 }
 0x2a1   :  { %v209_v56 = vsel %vm163_vm1, %v207_v54, inf  ;;  %v210_v57 = vsel %vm163_vm1, %v208_v55, inf }
 0x2a2   :  { %v211_v58 = vmin.f32 %v209_v56, %v210_v57 }
 0x2a4   :  { %212 = vmin.xlane.f32.xlu1 %v211_v58 }
 0x32d   :  { %v213_v59 = vpop.xlane.xlu1 %212 }
 0x32e   :  { %vm214_vm9 = vcmp.eq.f32.partialorder %v708_v26, %v213_v59  ;;  %vm215_vm10 = vcmp.eq.f32.partialorder %v710_v27, %v213_v59 }
 0x32f   :  { %v234_v60 = vsel %vm214_vm9, -1.0, %v198_v38  ;;  %v235_v61 = vsel %vm215_vm10, -1.0, %v199_v39  ;;  %v216_v62 = vsel %vm214_vm9, %v720_v35, 0.0  ;;  %v217_v63 = vsel %vm215_vm10, %v693_v12, 0.0 }
 0x330   :  { %v236_v0 = vsel %vm163_vm1, %v234_v60, -inf  ;;  %v237_v1 = vsel %vm163_vm1, %v235_v61, -inf  ;;  %v218_v2 = vsel %vm163_vm1, %v216_v62, 0.0  ;;  %v219_v3 = vsel %vm163_vm1, %v217_v63, 0.0 }
 0x331   :  { %v238_v4 = vmax.f32 %v236_v0, %v237_v1  ;;  %v756_v5 = vadd.f32 %v219_v3, %v218_v2  ;;  %v223_v6 = vsel %vm214_vm9, %v724_v37, 0.0  ;;  %v224_v7 = vsel %vm215_vm10, %v697_v14, 0.0 }
 0x332   :  { %v225_v8 = vsel %vm163_vm1, %v223_v6, 0.0  ;;  %v226_v9 = vsel %vm163_vm1, %v224_v7, 0.0 }
 0x333   :  { %239 = vmax.xlane.f32.xlu0 %v238_v4  ;;  %v762_v10 = vadd.f32 %v226_v9, %v225_v8 }
 0x3bc   :  { %v764_v11 = vpop.xlane.xlu0 %239 }
 0x3bd   :  { %vm241_vm11 = vcmp.eq.f32.partialorder %v234_v60, %v764_v11  ;;  %vm242_vm12 = vcmp.eq.f32.partialorder %v235_v61, %v764_v11 }
 0x3be   :  { %v243_v15 = vsel %vm241_vm11, %v708_v26, 256.0  ;;  %v244_v16 = vsel %vm242_vm12, %v710_v27, 256.0 }
 0x3bf   :  { %v245_v17 = vsel %vm163_vm1, %v243_v15, inf  ;;  %v246_v18 = vsel %vm163_vm1, %v244_v16, inf }
 0x3c0   :  { %v247_v19 = vmin.f32 %v245_v17, %v246_v18 }
 0x3c2   :  { %248 = vmin.xlane.f32.xlu1 %v247_v19 }
 0x44b   :  { %v249_v20 = vpop.xlane.xlu1 %248 }
 0x44c   :  { %vm250_vm13 = vcmp.eq.f32.partialorder %v708_v26, %v249_v20  ;;  %vm251_vm14 = vcmp.eq.f32.partialorder %v710_v27, %v249_v20 }
 0x44d   :  { %v270_v21 = vsel %vm250_vm13, -1.0, %v234_v60  ;;  %v271_v22 = vsel %vm251_vm14, -1.0, %v235_v61  ;;  %v252_v23 = vsel %vm250_vm13, %v720_v35, 0.0  ;;  %v253_v24 = vsel %vm251_vm14, %v693_v12, 0.0 }
 0x44e   :  { %v272_v25 = vsel %vm163_vm1, %v270_v21, -inf  ;;  %v273_v29 = vsel %vm163_vm1, %v271_v22, -inf  ;;  %v254_v30 = vsel %vm163_vm1, %v252_v23, 0.0  ;;  %v255_v31 = vsel %vm163_vm1, %v253_v24, 0.0 }
 0x44f   :  { %v274_v32 = vmax.f32 %v272_v25, %v273_v29  ;;  %v780_v33 = vadd.f32 %v255_v31, %v254_v30  ;;  %v259_v34 = vsel %vm250_vm13, %v724_v37, 0.0  ;;  %v260_v36 = vsel %vm251_vm14, %v697_v14, 0.0 }
 0x450   :  { %v261_v38 = vsel %vm163_vm1, %v259_v34, 0.0  ;;  %v262_v39 = vsel %vm163_vm1, %v260_v36, 0.0 }
 0x451   :  { %275 = vmax.xlane.f32.xlu0 %v274_v32  ;;  %v786_v40 = vadd.f32 %v262_v39, %v261_v38 }
 0x4da   :  { %v788_v41 = vpop.xlane.xlu0 %275 }
 0x4db   :  { %vm277_vm15 = vcmp.eq.f32.partialorder %v270_v21, %v788_v41  ;;  %vm278_vm0 = vcmp.eq.f32.partialorder %v271_v22, %v788_v41 }
 0x4dc   :  { %v279_v42 = vsel %vm277_vm15, %v708_v26, 256.0  ;;  %v280_v43 = vsel %vm278_vm0, %v710_v27, 256.0  ;;  %vm194_vm0 = vcmp.eq.s32.totalorder %v695_v13, 0 }
 0x4dd   :  { %v281_v44 = vsel %vm163_vm1, %v279_v42, inf  ;;  %v282_v45 = vsel %vm163_vm1, %v280_v43, inf }
 0x4de   :  { %v283_v46 = vmin.f32 %v281_v44, %v282_v45 }
 0x4e0   :  { %284 = vmin.xlane.f32.xlu1 %v283_v46 }
 0x569   :  { %v285_v48 = vpop.xlane.xlu1 %284 }
 0x56a   :  { %vm286_vm2 = vcmp.eq.f32.partialorder %v708_v26, %v285_v48  ;;  %vm287_vm3 = vcmp.eq.f32.partialorder %v710_v27, %v285_v48 }
 0x56b   :  { %v306_v49 = vsel %vm286_vm2, -1.0, %v270_v21  ;;  %v307_v50 = vsel %vm287_vm3, -1.0, %v271_v22  ;;  %v288_v51 = vsel %vm286_vm2, %v720_v35, 0.0  ;;  %v289_v54 = vsel %vm287_vm3, %v693_v12, 0.0 }
 0x56c   :  { %v308_v55 = vsel %vm163_vm1, %v306_v49, -inf  ;;  %v309_v56 = vsel %vm163_vm1, %v307_v50, -inf  ;;  %v290_v57 = vsel %vm163_vm1, %v288_v51, 0.0  ;;  %v291_v58 = vsel %vm163_vm1, %v289_v54, 0.0 }
 0x56d   :  { %v310_v59 = vmax.f32 %v308_v55, %v309_v56  ;;  %v804_v60 = vadd.f32 %v291_v58, %v290_v57  ;;  %v295_v61 = vsel %vm286_vm2, %v724_v37, 0.0  ;;  %v296_v62 = vsel %vm287_vm3, %v697_v14, 0.0 }
 0x56e   :  { %v297_v63 = vsel %vm163_vm1, %v295_v61, 0.0  ;;  %v298_v0 = vsel %vm163_vm1, %v296_v62, 0.0  ;;  %vm230_vm2 = vcmp.eq.s32.totalorder %v695_v13, 1  ;;  %vm266_vm3 = vcmp.eq.s32.totalorder %v695_v13, 2 }
 0x56f   :  { %311 = vmax.xlane.f32.xlu0 %v310_v59  ;;  %v810_v1 = vadd.f32 %v298_v0, %v297_v63 }
 0x5f8   :  { %v812_v2 = vpop.xlane.xlu0 %311 }
 0x5f9   :  { %vm313_vm4 = vcmp.eq.f32.partialorder %v306_v49, %v812_v2  ;;  %vm314_vm5 = vcmp.eq.f32.partialorder %v307_v50, %v812_v2 }
 0x5fa   :  { %v315_v3 = vsel %vm313_vm4, %v708_v26, 256.0  ;;  %v316_v4 = vsel %vm314_vm5, %v710_v27, 256.0  ;;  %vm302_vm4 = vcmp.eq.s32.totalorder %v695_v13, 3  ;;  %vm338_vm5 = vcmp.eq.s32.totalorder %v695_v13, 4 }
 0x5fb   :  { %v317_v6 = vsel %vm163_vm1, %v315_v3, inf  ;;  %v318_v7 = vsel %vm163_vm1, %v316_v4, inf }
 0x5fc   :  { %v319_v8 = vmin.f32 %v317_v6, %v318_v7 }
 0x5fe   :  { %320 = vmin.xlane.f32.xlu1 %v319_v8 }
 0x687   :  { %v321_v9 = vpop.xlane.xlu1 %320 }
 0x688   :  { %vm322_vm6 = vcmp.eq.f32.partialorder %v708_v26, %v321_v9  ;;  %vm323_vm7 = vcmp.eq.f32.partialorder %v710_v27, %v321_v9 }
 0x689   :  { %v342_v15 = vsel %vm322_vm6, -1.0, %v306_v49  ;;  %v343_v16 = vsel %vm323_vm7, -1.0, %v307_v50  ;;  %v324_v17 = vsel %vm322_vm6, %v720_v35, 0.0  ;;  %v325_v18 = vsel %vm323_vm7, %v693_v12, 0.0 }
 0x68a   :  { %v344_v19 = vsel %vm163_vm1, %v342_v15, -inf  ;;  %v345_v20 = vsel %vm163_vm1, %v343_v16, -inf  ;;  %v326_v21 = vsel %vm163_vm1, %v324_v17, 0.0  ;;  %v327_v22 = vsel %vm163_vm1, %v325_v18, 0.0 }
 0x68b   :  { %v346_v23 = vmax.f32 %v344_v19, %v345_v20  ;;  %v328_v24 = vadd.f32 %v327_v22, %v326_v21  ;;  %v331_v25 = vsel %vm322_vm6, %v724_v37, 0.0  ;;  %v332_v29 = vsel %vm323_vm7, %v697_v14, 0.0 }
 0x68c   :  { %v333_v30 = vsel %vm163_vm1, %v331_v25, 0.0  ;;  %v334_v31 = vsel %vm163_vm1, %v332_v29, 0.0  ;;  %vm374_vm6 = vcmp.eq.s32.totalorder %v695_v13, 5  ;;  %vm410_vm7 = vcmp.eq.s32.totalorder %v695_v13, 6 }
 0x68d   :  { %347 = vmax.xlane.f32.xlu0 %v346_v23  ;;  %v832_v32 = vadd.f32 %v334_v31, %v333_v30 }
 0x716   :  { %v834_v34 = vpop.xlane.xlu0 %347 }
 0x717   :  { %vm349_vm8 = vcmp.eq.f32.partialorder %v342_v15, %v834_v34  ;;  %vm350_vm9 = vcmp.eq.f32.partialorder %v343_v16, %v834_v34 }
 0x718   :  { %v351_v36 = vsel %vm349_vm8, %v708_v26, 256.0  ;;  %v352_v38 = vsel %vm350_vm9, %v710_v27, 256.0  ;;  %vm446_vm8 = vcmp.eq.s32.totalorder %v695_v13, 7 }
 0x719   :  { %v353_v39 = vsel %vm163_vm1, %v351_v36, inf  ;;  %v354_v42 = vsel %vm163_vm1, %v352_v38, inf }
 0x71a   :  { %v355_v43 = vmin.f32 %v353_v39, %v354_v42 }
 0x71c   :  { %356 = vmin.xlane.f32.xlu1 %v355_v43 }
 0x7a5   :  { %v357_v44 = vpop.xlane.xlu1 %356 }
 0x7a6   :  { %vm358_vm10 = vcmp.eq.f32.partialorder %v708_v26, %v357_v44  ;;  %vm359_vm11 = vcmp.eq.f32.partialorder %v710_v27, %v357_v44 }
 0x7a7   :  { %v378_v45 = vsel %vm358_vm10, -1.0, %v342_v15  ;;  %v379_v46 = vsel %vm359_vm11, -1.0, %v343_v16  ;;  %v360_v48 = vsel %vm358_vm10, %v720_v35, 0.0  ;;  %v361_v49 = vsel %vm359_vm11, %v693_v12, 0.0 }
 0x7a8   :  { %v380_v50 = vsel %vm163_vm1, %v378_v45, -inf  ;;  %v381_v51 = vsel %vm163_vm1, %v379_v46, -inf  ;;  %v362_v54 = vsel %vm163_vm1, %v360_v48, 0.0  ;;  %v363_v55 = vsel %vm163_vm1, %v361_v49, 0.0 }
 0x7a9   :  { %v382_v56 = vmax.f32 %v380_v50, %v381_v51  ;;  %v364_v57 = vadd.f32 %v363_v55, %v362_v54  ;;  %v367_v58 = vsel %vm358_vm10, %v724_v37, 0.0  ;;  %v368_v59 = vsel %vm359_vm11, %v697_v14, 0.0 }
 0x7aa   :  { %v369_v61 = vsel %vm163_vm1, %v367_v58, 0.0  ;;  %v370_v62 = vsel %vm163_vm1, %v368_v59, 0.0  ;;  %vm464_vm11 = vcmask 60416  }
 0x7ab   :  { %383 = vmax.xlane.f32.xlu0 %v382_v56  ;;  %v854_v63 = vadd.f32 %v370_v62, %v369_v61 }
 0x834   :  { %v384_v0 = vpop.xlane.xlu0 %383 }
 0x835   :  { %vm385_vm12 = vcmp.eq.f32.partialorder %v378_v45, %v384_v0  ;;  %vm386_vm13 = vcmp.eq.f32.partialorder %v379_v46, %v384_v0 }
 0x836   :  { %v387_v3 = vsel %vm385_vm12, %v708_v26, 256.0  ;;  %v388_v4 = vsel %vm386_vm13, %v710_v27, 256.0 }
 0x837   :  { %v389_v6 = vsel %vm163_vm1, %v387_v3, inf  ;;  %v390_v7 = vsel %vm163_vm1, %v388_v4, inf }
 0x838   :  { %v391_v8 = vmin.f32 %v389_v6, %v390_v7 }
 0x83a   :  { %392 = vmin.xlane.f32.xlu1 %v391_v8 }
 0x8c3   :  { %v393_v9 = vpop.xlane.xlu1 %392 }
 0x8c4   :  { %vm394_vm14 = vcmp.eq.f32.partialorder %v708_v26, %v393_v9  ;;  %vm395_vm15 = vcmp.eq.f32.partialorder %v710_v27, %v393_v9 }
 0x8c5   :  { %v414_v15 = vsel %vm394_vm14, -1.0, %v378_v45  ;;  %v415_v16 = vsel %vm395_vm15, -1.0, %v379_v46  ;;  %v403_v20 = vsel %vm394_vm14, %v724_v37, 0.0  ;;  %v404_v21 = vsel %vm395_vm15, %v697_v14, 0.0 }
 0x8c6   :  { %v416_v17 = vsel %vm163_vm1, %v414_v15, -inf  ;;  %v417_v18 = vsel %vm163_vm1, %v415_v16, -inf  ;;  %v405_v22 = vsel %vm163_vm1, %v403_v20, 0.0  ;;  %v406_v23 = vsel %vm163_vm1, %v404_v21, 0.0 }
 0x8c7   :  { %v418_v19 = vmax.f32 %v416_v17, %v417_v18  ;;  %v407_v25 = vadd.f32 %v406_v23, %v405_v22  ;;  %v396_v29 = vsel %vm394_vm14, %v720_v35, 0.0  ;;  %v397_v30 = vsel %vm395_vm15, %v693_v12, 0.0 }
 0x8c8   :  { %v398_v31 = vsel %vm163_vm1, %v396_v29, 0.0  ;;  %v399_v36 = vsel %vm163_vm1, %v397_v30, 0.0 }
 0x8c9   :  { %419 = vmax.xlane.f32.xlu0 %v418_v19 }
 0x8cd   :  { %185 = vadd.xlane.f32.xlu0 %v732_v47  ;;  %v400_v47 = vadd.f32 %v399_v36, %v398_v31 }
 0x8d1   :  { %221 = vadd.xlane.f32.xlu0 %v756_v5  ;;  %v195_v5 = vsel %vm194_vm0, %v712_v28, -1.0 }
 0x8d5   :  { %257 = vadd.xlane.f32.xlu0 %v780_v33  ;;  %v231_v33 = vsel %vm230_vm2, %v740_v53, %v195_v5 }
 0x8d9   :  { %293 = vadd.xlane.f32.xlu0 %v804_v60  ;;  %v267_v60 = vsel %vm266_vm3, %v764_v11, %v231_v33 }
 0x8dd   :  { %329 = vadd.xlane.f32.xlu0 %v328_v24  ;;  %v303_v24 = vsel %vm302_vm4, %v788_v41, %v267_v60 }
 0x8de   :  { %v339_v28 = vsel %vm338_vm5, %v812_v2, %v303_v24 }
 0x8df   :  { %v375_v53 = vsel %vm374_vm6, %v834_v34, %v339_v28 }
 0x8e0   :  { %v411_v11 = vsel %vm410_vm7, %v384_v0, %v375_v53 }
 0x8e1   :  { %365 = vadd.xlane.f32.xlu0 %v364_v57 }
 0x8e5   :  { %401 = vadd.xlane.f32.xlu0 %v400_v47 }
 0x952   :  { %v420_v38 = vpop.xlane.xlu0 %419 }
 0x953   :  { %vm421_vm9 = vcmp.eq.f32.partialorder %v414_v15, %v420_v38  ;;  %vm422_vm10 = vcmp.eq.f32.partialorder %v415_v16, %v420_v38  ;;  %v447_v41 = vsel %vm446_vm8, %v420_v38, %v411_v11 }
 0x954   :  { %450 = vst [vmem:[#allocation2] sm:$0xf] %v447_v41  ;;  %v456_v39 = vmax.f32 %v447_v41, 0.0  ;;  %v423_v42 = vsel %vm421_vm9, %v708_v26, 256.0  ;;  %v424_v2 = vsel %vm422_vm10, %v710_v27, 256.0 }
 0x955   :  { %v425_v43 = vsel %vm163_vm1, %v423_v42, inf  ;;  %v426_v44 = vsel %vm163_vm1, %v424_v2, inf }
 0x956   :  { %v427_v34 = vmin.f32 %v425_v43, %v426_v44  ;;  %542 = vrsqrt.f32 %v456_v39  ;;  %vm459_vm12 = vcmp.eq.f32.partialorder %v456_v39, inf  ;;  %v462_v48 = vand.u32 2147483648, %v456_v39 }
 0x957   :  { %vm461_vm13 = vcmp.eq.f32.partialorder %v456_v39, 0.0 }
 0x958   :  { %428 = vmin.xlane.f32.xlu1 %v427_v34 }
 0x95c   :  { %192 = vadd.xlane.f32.xlu1 %v738_v52 }
 0x960   :  { %228 = vadd.xlane.f32.xlu1 %v762_v10 }
 0x963   :  { %v543_v45 = vpop.eup %542 }
 0x964   :  { %264 = vadd.xlane.f32.xlu1 %v786_v40  ;;  %v458_v46 = vmul.f32 %v543_v45, %v456_v39 }
 0x966   :  { %v460_v49 = vsel %vm459_vm12, %v456_v39, %v458_v46 }
 0x967   :  { %v463_v50 = vsel %vm461_vm13, %v462_v48, %v460_v49 }
 0x968   :  { %300 = vadd.xlane.f32.xlu1 %v810_v1  ;;  %465 = vst.msk [vmem:[#allocation10] sm:$0xf] %vm464_vm11, %v463_v50 }
 0x96c   :  { %336 = vadd.xlane.f32.xlu1 %v832_v32 }
 0x970   :  { %372 = vadd.xlane.f32.xlu1 %v854_v63 }
 0x974   :  { %408 = vadd.xlane.f32.xlu1 %v407_v25 }
 0x9e1   :  { %v429_v52 = vpop.xlane.xlu1 %428 }
 0x9e2   :  { %vm430_vm14 = vcmp.eq.f32.partialorder %v708_v26, %v429_v52  ;;  %vm431_vm15 = vcmp.eq.f32.partialorder %v710_v27, %v429_v52 }
 0x9e3   :  { %v432_v10 = vsel %vm430_vm14, %v720_v35, 0.0  ;;  %v433_v40 = vsel %vm431_vm15, %v693_v12, 0.0  ;;  %v439_v51 = vsel %vm430_vm14, %v724_v37, 0.0  ;;  %v440_v1 = vsel %vm431_vm15, %v697_v14, 0.0 }
 0x9e4   :  { %v441_v54 = vsel %vm163_vm1, %v439_v51, 0.0  ;;  %v442_v32 = vsel %vm163_vm1, %v440_v1, 0.0  ;;  %v434_v55 = vsel %vm163_vm1, %v432_v10, 0.0  ;;  %v435_v56 = vsel %vm163_vm1, %v433_v40, 0.0 }
 0x9e5   :  { %v443_v57 = vadd.f32 %v442_v32, %v441_v54  ;;  %v436_v26 = vadd.f32 %v435_v56, %v434_v55 }
 0x9e7   :  { %444 = vadd.xlane.f32.xlu1 %v443_v57  ;;  %437 = vadd.xlane.f32.xlu0 %v436_v26 }
 0x9e8   :  { %595 = shalt.err (!%p592_p0)
}
 0x9e9   :  { %477 = dma.vmem_to_hbm [thread:$0]  %s475_s1, 64, %s984_s2, [#allocation7]   ;;  %v186_v12 = vpop.xlane.xlu0 %185  ;;  %v193_v14 = vpop.xlane.xlu1 %192 }
 0x9ea   :  { %v196_v4 = vsel %vm194_vm0, %v186_v12, 0.0  ;;  %v197_v6 = vsel %vm194_vm0, %v193_v14, 0.0  ;;  %s660_s2 = smov [#allocation11]   ;;  %s661_s5 = smov [#allocation13]  }
 0x9eb   :  { %s484_s30 = sshll.u32 %s660_s2, 4  ;;  %s494_s6 = sshll.u32 %s661_s5, 4  ;;  %s485_s30 = int_to_ptr.vmem [resolvable:$true] %s484_s30  ;;  %s495_s6 = int_to_ptr.vmem [resolvable:$true] %s494_s6 }
 0x9ec   :  { %s604_s7 = scalar_lea.vmem %s485_s30, 64  ;;  %p609_p2 = scmp.lt.s32.totalorder %s485_s30, %s485_s30 }
 0x9ed   :  { %v222_v27 = vpop.xlane.xlu0 %221  ;;  %v229_v35 = vpop.xlane.xlu1 %228  ;;  %p605_p1 = scmp.ne.s32.totalorder %s485_s30, %s604_s7  ;;  %p610_p3 = scmp.lt.s32.totalorder %s604_s7, %s604_s7 }
 0x9ee   :  { %v232_v7 = vsel %vm230_vm2, %v222_v27, %v196_v4  ;;  %v233_v8 = vsel %vm230_vm2, %v229_v35, %v197_v6 }
 0x9ef   :  { %p611_p4 = por %p610_p3, %p609_p2 }
 0x9f1   :  { %v258_v37 = vpop.xlane.xlu0 %257  ;;  %v265_v58 = vpop.xlane.xlu1 %264  ;;  %p612_p5 = pnand %p611_p4, %p605_p1 }
 0x9f2   :  { %v268_v9 = vsel %vm266_vm3, %v258_v37, %v232_v7  ;;  %v269_v16 = vsel %vm266_vm3, %v265_v58, %v233_v8 }
 0x9f5   :  { %v294_v59 = vpop.xlane.xlu0 %293  ;;  %v301_v61 = vpop.xlane.xlu1 %300 }
 0x9f6   :  { %v304_v18 = vsel %vm302_vm4, %v294_v59, %v268_v9  ;;  %v305_v19 = vsel %vm302_vm4, %v301_v61, %v269_v16 }
 0x9f9   :  { %v330_v62 = vpop.xlane.xlu0 %329  ;;  %v337_v63 = vpop.xlane.xlu1 %336 }
 0x9fa   :  { %v340_v20 = vsel %vm338_vm5, %v330_v62, %v304_v18  ;;  %v341_v21 = vsel %vm338_vm5, %v337_v63, %v305_v19 }
 0x9fd   :  { %v366_v0 = vpop.xlane.xlu0 %365  ;;  %v373_v3 = vpop.xlane.xlu1 %372 }
 0x9fe   :  { %v376_v22 = vsel %vm374_vm6, %v366_v0, %v340_v20  ;;  %v377_v23 = vsel %vm374_vm6, %v373_v3, %v341_v21 }
 0xa01   :  { %v402_v15 = vpop.xlane.xlu0 %401  ;;  %v409_v17 = vpop.xlane.xlu1 %408 }
 0xa02   :  { %v412_v25 = vsel %vm410_vm7, %v402_v15, %v376_v22  ;;  %v413_v29 = vsel %vm410_vm7, %v409_v17, %v377_v23 }
 0xa70   :  { %v445_v30 = vpop.xlane.xlu1 %444  ;;  %v438_v31 = vpop.xlane.xlu0 %437 }
 0xa71   :  { %v449_v36 = vsel %vm446_vm8, %v445_v30, %v413_v29  ;;  %v448_v47 = vsel %vm446_vm8, %v438_v31, %v412_v25 }
 0xa72   :  { %452 = vst [vmem:[#allocation4] sm:$0xf] %v449_v36  ;;  %451 = vst [vmem:[#allocation3] sm:$0xf] %v448_v47 }
 0xa73   :  { %466 = vst.msk [vmem:[#allocation11] sm:$0xf] %vm464_vm11, %v448_v47  ;;  %467 = vst.msk [vmem:[#allocation13] sm:$0xf] %vm464_vm11, %v449_v36 }
 0xa74   :  { %615 = shalt.err (!%p612_p5)
}
 0xa75   :  { %487 = dma.vmem_to_hbm [thread:$0]  %s485_s30, 64, %s985_s3, [#allocation12]  }
 0xa76   :  { %s624_s10 = scalar_lea.vmem %s495_s6, 64  ;;  %p629_p7 = scmp.lt.s32.totalorder %s495_s6, %s495_s6 }
 0xa77   :  { %p625_p6 = scmp.ne.s32.totalorder %s495_s6, %s624_s10  ;;  %p630_p8 = scmp.lt.s32.totalorder %s624_s10, %s624_s10 }
 0xa79   :  { %p631_p9 = por %p630_p8, %p629_p7 }
 0xa7b   :  { %p632_p10 = pnand %p631_p9, %p625_p6 }
 0xa7d   :  { %635 = shalt.err (!%p632_p10)
}
 0xa7e   :  { %497 = dma.vmem_to_hbm [thread:$0]  %s495_s6, 64, %s986_s4, [#allocation12]  }
 0xa7f   :  { %648 = dma.done.wait [#allocation7], 64  }
 0xa80   :  { %649 = vsyncadd [#allocation7], 4294967232 }
 0xa81   :  { %650 = dma.done.wait [#allocation12], 128  }
 0xa82   :  { %651 = vsyncadd [#allocation12], 4294967168 }
 0xa83   :  { %507 = vsyncpa [#allocation6], 1 }
 0xa84   :  { %508 = vsyncpa [#allocation9], 1 }
 0xa85   :  { %509 = vsyncpa [#allocation7], 1 }
 0xa86   :  { %510 = vsyncpa [#allocation12], 1 }

</bundles_post_ra>
